<compile_context>
chip_gen: v5e
topology: v5e:2x2
jax: 0.10.0
libtpu: 0.0.40
codegen_flags: <defaults>
</compile_context>

<pallas_src>
import numpy as np
import jax
import jax.numpy as jnp
from jax.experimental import pallas as pl
from jax.experimental.pallas import tpu as pltpu


def _round_up(n, m):
    return ((n + m - 1) // m) * m


def _cdiv(a, b):
    return -(-a // b)


# ----------------------------- Pallas kernel --------------------------------
def bow_linear_sigmoid_kernel(x_ref, w_ref, b_ref, o_ref, acc_ref):
    # x_ref:   [TB, TV]               bf16  BOW-count tile (streamed from HBM)
    # w_ref:   [V_pad, 128] or [TV, 128] bf16 weight column matrix (col 0 real)
    # b_ref:   [1, 1]                 f32   bias, in SMEM (scalar read)
    # o_ref:   [TB, 128]              f32   lane-dense output slab (col 0 = result)
    # acc_ref: [TB, 128]              f32   lane-dense VMEM accumulator over vocab
    k = pl.program_id(1)
    tv = x_ref.shape[1]

    @pl.when(k == 0)
    def _():
        acc_ref[...] = jnp.zeros_like(acc_ref)

    if w_ref.shape[0] > tv:
        # Whole (padded) weight matrix resident in VMEM: slice the k-th vocab tile.
        off = pl.multiple_of(k * tv, 128)
        w_tile = w_ref[pl.ds(off, tv), :]
    else:
        # Weight tile streamed per grid step (or single vocab tile).
        w_tile = w_ref[...]

    # MXU matmul (vector-extended slot) -> lane-dense f32 accumulate; frees
    # VPU/XLU so the kernel stays strictly HBM-bound on all chips.
    acc_ref[...] += jnp.dot(x_ref[...], w_tile, preferred_element_type=jnp.float32)

    @pl.when(k == pl.num_programs(1) - 1)
    def _():
        z = acc_ref[:, 0:1] + b_ref[0, 0]
        sig = 1.0 / (1.0 + jnp.exp(-z))   # exact sigmoid; runs once per batch tile
        o_ref[...] = jnp.broadcast_to(sig, o_ref.shape)


# ------------------------------- wrapper -------------------------------------
def bow_classifier_forward(x, w_row, b, *, tb=512, tv=8192,
                           w_resident_limit_bytes=8 * 1024 * 1024):
    """x: [B, V] BOW counts, w_row: [1, V] f32, b: [1, 1] f32 -> [B, 1] f32.

    Equivalent to torch.sigmoid(nn.Linear(V, 1)(x)) with weight = w_row, bias = b.
    Pass x pre-padded to (batch-tile, vocab-tile) multiples and already in bf16
    to skip the one-time pad+cast pass (it is the only extra HBM traffic).
    """
    B, V = x.shape
    assert w_row.shape == (1, V)

    # ---- batch tiling: multiple of 8; >= 2 tiles when possible (v7x megacore) ----
    b8 = _round_up(B, 8)
    tb_eff = min(tb, b8)
    if b8 >= 16:
        tb_eff = min(tb_eff, _round_up(_cdiv(b8, 2), 8))
    grid_b = _cdiv(b8, tb_eff)
    tb_eff = _round_up(_cdiv(b8, grid_b), 8)
    b_pad = grid_b * tb_eff

    # ---- vocab tiling: multiple of 128; balanced so padding stays < 128 cols ----
    v128 = _round_up(V, 128)
    tv_eff = min(tv, v128)
    grid_k = _cdiv(v128, tv_eff)
    tv_eff = _round_up(_cdiv(v128, grid_k), 128)
    v_pad = grid_k * tv_eff

    # ---- operands ----
    if x.shape == (b_pad, v_pad) and x.dtype == jnp.bfloat16:
        x_p = x                                    # fast path: no extra HBM pass
    else:
        # Single pad+cast pass. BOW counts are exact in bf16 for values <= 256.
        x_p = (jnp.zeros((b_pad, v_pad), jnp.bfloat16)
               .at[:B, :V].set(x.astype(jnp.bfloat16)))

    # Weight as a bf16 [v_pad, 128] column matrix (column 0 = real weights).
    w_vec = jnp.asarray(w_row, jnp.float32).reshape(V).astype(jnp.bfloat16)
    w_col = jnp.zeros((v_pad, 128), jnp.bfloat16).at[:V, 0].set(w_vec)
    b_p = jnp.asarray(b, jnp.float32).reshape(1, 1)

    # Keep the whole weight matrix resident in VMEM when small (constant block
    # index -> fetched once, no per-step DMA, no re-fetch across batch tiles);
    # stream per-(tv, 128) tiles for very large vocabularies.
    if v_pad * 128 * 2 <= w_resident_limit_bytes:
        w_spec = pl.BlockSpec((v_pad, 128), lambda i, k: (0, 0))
    else:
        w_spec = pl.BlockSpec((tv_eff, 128), lambda i, k: (k, 0))

    out = pl.pallas_call(
        bow_linear_sigmoid_kernel,
        out_shape=jax.ShapeDtypeStruct((b_pad, 128), jnp.float32),
        grid=(grid_b, grid_k),                      # reduction (vocab) axis last
        in_specs=[
            pl.BlockSpec((tb_eff, tv_eff), lambda i, k: (i, k)),   # stream x tiles
            w_spec,
            pl.BlockSpec(memory_space=pltpu.MemorySpace.SMEM),     # bias scalar
        ],
        out_specs=pl.BlockSpec((tb_eff, 128), lambda i, k: (i, 0)),  # resident over k
        scratch_shapes=[pltpu.VMEM((tb_eff, 128), jnp.float32)],
        compiler_params=pltpu.CompilerParams(
            dimension_semantics=("parallel", "arbitrary"),
            # ~21-25 MiB needed at default tiles; 48 MiB leaves slack on v7x's
            # 64 MiB/TC and raises the 16/32 MiB scoped defaults on v5e/v6e.
            vmem_limit_bytes=48 * 1024 * 1024,
        ),
    )(x_p, w_col, b_p)

    return out[:B, 0:1]


# --------------------------- host-side glue ----------------------------------
def bow_vectors(token_sentences, vocab_size):
    """Equivalent of BOWClassifier.bow_vectors, on integer token ids.

    Tokens outside [0, vocab_size - 2] are counted in the 'null' slot
    (index vocab_size - 1).
    """
    null_idx = vocab_size - 1
    vec = np.zeros((len(token_sentences), vocab_size), dtype=np.float32)
    for i, sent in enumerate(token_sentences):
        for tok in sent:
            idx = tok if 0 <= tok < null_idx else null_idx
            vec[i, idx] += 1.0
    return vec


if __name__ == "__main__":
    VOCAB_SIZE = 200     # 199 real words + 'null' slot
    BATCH = 24           # number of sentences
    SEQ = 8              # words per sentence

    key = jax.random.PRNGKey(0)
    k_tok, k_w, k_b = jax.random.split(key, 3)

    # Deterministic "sentences" of token ids; ids >= VOCAB_SIZE - 1 go to 'null'.
    token_ids = np.asarray(
        jax.random.randint(k_tok, (BATCH, SEQ), minval=0, maxval=VOCAB_SIZE + 32))
    x = jnp.asarray(bow_vectors(token_ids.tolist(), VOCAB_SIZE))  # [B, V] f32

    # nn.Linear(VOCAB_SIZE, 1): weight [1, V], bias [1, 1].
    bound = 1.0 / np.sqrt(VOCAB_SIZE)
    w_row = jax.random.uniform(k_w, (1, VOCAB_SIZE), jnp.float32, -bound, bound)
    bias = jax.random.uniform(k_b, (1, 1), jnp.float32, -bound, bound)

    ref = jax.nn.sigmoid(x @ w_row.T + bias)

    # 1) Default (large) tiles, clamped to the small demo problem: grid (2, 1),
    #    resident weight, exercises the megacore batch-tile split.
    out_default = jax.block_until_ready(bow_classifier_forward(x, w_row, bias))
    # 2) Small tiles: grid (3 batch x 2 vocab), exercises cross-vocab-tile
    #    accumulation and the in-kernel slicing of the resident weight matrix.
    out_small = jax.block_until_ready(
        bow_classifier_forward(x, w_row, bias, tb=8, tv=128))
    # 3) Same small tiles but force the streamed-weight path.
    out_stream = jax.block_until_ready(
        bow_classifier_forward(x, w_row, bias, tb=8, tv=128,
                               w_resident_limit_bytes=0))

    for out in (out_default, out_small, out_stream):
        assert out.shape == (BATCH, 1)
        np.testing.assert_allclose(np.asarray(out), np.asarray(ref),
                                   rtol=2e-3, atol=2e-3)

    print("KERNEL_OK")
</pallas_src>

<mosaic_0001>
module attributes {stable_mosaic.version = 11 : i64} {
  func.func @bow_linear_sigmoid_kernel(%arg0: i32, %arg1: i32, %arg2: memref<16x256xbf16, #tpu.memory_space<vmem>>, %arg3: memref<256x128xbf16, #tpu.memory_space<vmem>>, %arg4: memref<1x1xf32, #tpu.memory_space<smem>>, %arg5: memref<16x128xf32, #tpu.memory_space<vmem>>, %arg6: memref<16x128xf32, #tpu.memory_space<vmem>>) attributes {dimension_semantics = [#tpu.dimension_semantics<parallel>, #tpu.dimension_semantics<arbitrary>], iteration_bounds = array<i64: 2, 1>, scalar_prefetch = 0 : i64, scratch_operands = 1 : i64, tpu.core_type = #tpu.core_type<tc>, window_params = [{transform_indices = @transform_0, window_bounds = array<i64: 16, 256>}, {pipeline_mode = #tpu.pipeline_mode<synchronous>, transform_indices = @transform_1, window_bounds = array<i64: 256, 128>}, {transform_indices = @transform_2, window_bounds = array<i64: 1, 1>}, {transform_indices = @transform_3, window_bounds = array<i64: 16, 128>}]} {
    %c0_i32 = arith.constant 0 : i32
    %0 = arith.cmpi eq, %arg1, %c0_i32 : i32
    %1 = arith.extui %0 : i1 to i32
    %c0_i32_0 = arith.constant 0 : i32
    %2 = arith.cmpi ne, %1, %c0_i32_0 : i32
    scf.if %2 {
      %cst_10 = arith.constant 0.000000e+00 : f32
      %12 = vector.broadcast %cst_10 : f32 to vector<16x128xf32>
      %c0_11 = arith.constant 0 : index
      %c0_12 = arith.constant 0 : index
      %13 = vector.load %arg6[%c0_11, %c0_12] : memref<16x128xf32, #tpu.memory_space<vmem>>, vector<16x128xf32>
      tpu.vector_store %arg6[%c0_11, %c0_12], %12 {strides = array<i32>} : memref<16x128xf32, #tpu.memory_space<vmem>>, vector<16x128xf32>,
    } else {
    }
    %c0 = arith.constant 0 : index
    %c0_1 = arith.constant 0 : index
    %3 = vector.load %arg3[%c0, %c0_1] : memref<256x128xbf16, #tpu.memory_space<vmem>>, vector<256x128xbf16>
    %c0_2 = arith.constant 0 : index
    %c0_3 = arith.constant 0 : index
    %4 = vector.load %arg6[%c0_2, %c0_3] : memref<16x128xf32, #tpu.memory_space<vmem>>, vector<16x128xf32>
    %c0_4 = arith.constant 0 : index
    %c0_5 = arith.constant 0 : index
    %5 = vector.load %arg2[%c0_4, %c0_5] : memref<16x256xbf16, #tpu.memory_space<vmem>>, vector<16x256xbf16>
    %cst = arith.constant dense<0.000000e+00> : vector<16x128xf32>
    %6 = tpu.matmul %5, %3, %cst {dimension_numbers = #tpu.dot_dimension_numbers<[1], [0], [0], [1], [0, 0, 1, 1], [], []>} : vector<16x256xbf16>, vector<256x128xbf16>, vector<16x128xf32> -> vector<16x128xf32>
    %7 = arith.addf %4, %6 : vector<16x128xf32>
    %c0_6 = arith.constant 0 : index
    %c0_7 = arith.constant 0 : index
    %8 = vector.load %arg6[%c0_6, %c0_7] : memref<16x128xf32, #tpu.memory_space<vmem>>, vector<16x128xf32>
    tpu.vector_store %arg6[%c0_6, %c0_7], %7 {strides = array<i32>} : memref<16x128xf32, #tpu.memory_space<vmem>>, vector<16x128xf32>,
    %c0_i32_8 = arith.constant 0 : i32
    %9 = arith.cmpi eq, %arg1, %c0_i32_8 : i32
    %10 = arith.extui %9 : i1 to i32
    %c0_i32_9 = arith.constant 0 : i32
    %11 = arith.cmpi ne, %10, %c0_i32_9 : i32
    scf.if %11 {
      %c0_10 = arith.constant 0 : index
      %c0_11 = arith.constant 0 : index
      %12 = vector.load %arg6[%c0_10, %c0_11] : memref<16x128xf32, #tpu.memory_space<vmem>>, vector<16x1xf32>
      %c0_12 = arith.constant 0 : index
      %c0_13 = arith.constant 0 : index
      %13 = memref.load %arg4[%c0_12, %c0_13] : memref<1x1xf32, #tpu.memory_space<smem>>
      %14 = vector.broadcast %13 : f32 to vector<16x1xf32>
      %15 = arith.addf %12, %14 : vector<16x1xf32>
      %cst_14 = arith.constant 0.000000e+00 : f32
      %16 = vector.broadcast %cst_14 : f32 to vector<16x1xf32>
      %17 = arith.subf %16, %15 : vector<16x1xf32>
      %18 = math.exp %17 : vector<16x1xf32>
      %cst_15 = arith.constant 1.000000e+00 : f32
      %19 = vector.broadcast %cst_15 : f32 to vector<16x1xf32>
      %20 = arith.addf %19, %18 : vector<16x1xf32>
      %cst_16 = arith.constant 1.000000e+00 : f32
      %21 = vector.broadcast %cst_16 : f32 to vector<16x1xf32>
      %22 = arith.divf %21, %20 : vector<16x1xf32>
      %23 = vector.shape_cast %22 : vector<16x1xf32> to vector<16x1xf32>
      %24 = vector.broadcast %23 : vector<16x1xf32> to vector<16x128xf32>
      %c0_17 = arith.constant 0 : index
      %c0_18 = arith.constant 0 : index
      %25 = vector.load %arg5[%c0_17, %c0_18] : memref<16x128xf32, #tpu.memory_space<vmem>>, vector<16x128xf32>
      tpu.vector_store %arg5[%c0_17, %c0_18], %24 {strides = array<i32>} : memref<16x128xf32, #tpu.memory_space<vmem>>, vector<16x128xf32>,
    } else {
    }
    return
  }
  func.func @transform_0(%arg0: i32, %arg1: i32) -> (i32, i32) {
    %c0_i32 = arith.constant 0 : i32
    return %arg0, %arg1 : i32, i32
  }
  func.func @transform_1(%arg0: i32, %arg1: i32) -> (i32, i32) {
    %c0_i32 = arith.constant 0 : i32
    %c0_i32_0 = arith.constant 0 : i32
    %c0_i32_1 = arith.constant 0 : i32
    return %c0_i32, %c0_i32_0 : i32, i32
  }
  func.func @transform_2(%arg0: i32, %arg1: i32) -> (i32, i32) {
    %c0_i32 = arith.constant 0 : i32
    %c0_i32_0 = arith.constant 0 : i32
    %c0_i32_1 = arith.constant 0 : i32
    return %c0_i32, %c0_i32_0 : i32, i32
  }
  func.func @transform_3(%arg0: i32, %arg1: i32) -> (i32, i32) {
    %c0_i32 = arith.constant 0 : i32
    %c0_i32_0 = arith.constant 0 : i32
    return %arg0, %c0_i32 : i32, i32
  }
}

</mosaic_0001>

<bundles_post_ra>
// kernel: tpu_custom_call.1
= control target key start
LH: loop header
LB: loop body
LE: loop exit
PB: predicated region body
PF: predicated region fallthrough
CT: control target
= control target key end

     0   :  { %s1116_s0 = inlined_call_operand.hbm [shape: bf16[32,256], index: 0, kind: input, shape index: {}]   ;;  %s1117_s1 = inlined_call_operand.hbm [shape: bf16[256,128], index: 1, kind: input, shape index: {}]   ;;  %s1118_s2 = inlined_call_operand.<no memory space> [shape: f32[1,1], index: 2, kind: input, shape index: {}]   ;;  %s1119_s3 = inlined_call_operand.hbm [shape: f32[32,128], index: 3, kind: output, shape index: {}]  }
   0x1   :  { %8 = sst [smem:[#allocation3]] %s1118_s2 }
   0x2   :  { %9 = vsyncpa [#allocation5], 0 }
   0x3   :  { %11 = vsyncpa [#allocation5 + $0x1], 0 }
   0x4   :  { %12 = vsyncpa [#allocation8], 0 }
   0x5   :  { %13 = vsyncpa [#allocation6], 0 }
   0x6   :  { %15 = vsyncpa [#allocation6 + $0x1], 0  ;;  %s957_s14 = smov 0   ;;  %s959_s15 = smov 0  }
   0x7   :  { %s961_s16 = smov 0   ;;  %s963_s17 = smov 0  }
   0x8   :  { %s965_s18 = smov 0   ;;  %s967_s19 = smov 0  }
   0x9 LB: > { %s578_s2 = sadd.s32 4294967295, %s924_s19   ;;  %s579_s20 = sadd.s32 4294967294, %s924_s19   ;;  %s924_s19 = sphi %s967_s19, %s21_s19   ;;  %s920_s18 = sphi %s965_s18, %s1131_s18   ;;  %s916_s17 = sphi %s963_s17, %s1130_s17   ;;  %s912_s16 = sphi %s961_s16, %s1129_s16   ;;  %s908_s15 = sphi %s959_s15, %s1128_s15   ;;  %s904_s14 = sphi %s957_s14, %s1127_s14  }
   0xa   : > { %p55_p0 = scmp.ne.s32.totalorder %s908_s15, %s904_s14  ;;  %p991_p1 = scmp.eq.s32.totalorder %s578_s2, 0 }
   0xb   : > { %p995_p2 = scmp.eq.s32.totalorder %s578_s2, 1  ;;  %p127_p3 = scmp.eq.s32.totalorder %s579_s20, 1 }
   0xc   : > { %p1001_p4 = por %p991_p1, %p55_p0  ;;  %p580_p5 = scmp.ge.s32.totalorder %s924_s19, 1 }
   0xd   : > { %p1006_p6 = por %p127_p3, %p55_p0  ;;  %p134_p7 = scmp.lt.s32.totalorder %s924_s19, 3 }
   0xe   : > { %s145_s27 = sshll.u32 %s1117_s1, 4  ;;  %s926_s29 = smov [#allocation7]   ;;  %s146_s27 = int_to_ptr.hbm [resolvable:$true] %s145_s27 }
   0xf   : > { %p1014_p8 = pnand %p580_p5, %p134_p7  ;;  %s147_s30 = sshll.u32 %s926_s29, 4  ;;  %s148_s30 = int_to_ptr.vmem [resolvable:$true] %s147_s30 }
  0x10   : > { %p582_p11 = scmp.ge.s32.totalorder %s924_s19, 2  ;;  %s927_s4 = smov 64  }
  0x11   : > { %p697_p9 = pneg %p1014_p8  ;;  %s928_s5 = smov 4  }
  0x12   : > { %s33_s6 = sadd.s32 1, %s920_s18  ;;  %s42_s7 = sadd.s32 1, %s912_s16 }
  0x13   : > { %p698_p10 = pnand %p697_p9, %p991_p1  ;;  %p35_p12 = scmp.ge.s32.totalorder %s33_s6, 2 }
  0x14   : > { %p49_p13 = scmp.ne.s32.totalorder %s912_s16, %s908_s15  ;;  %p50_p0 = scmp.eq.s32.totalorder %s924_s19, 0 }
  0x15   : > { %700 = dma.hbm_to_vmem [thread:$0]  (!%p698_p10), %s146_s27, 2048, %s148_s30, [#allocation8], %s927_s4, %s927_s4, %s928_s5  }
  0x16   : > { %s1133_s6 = smov (%p35_p12, %s33_s6), 0  ;;  %p1030_p3 = por %p50_p0, %p49_p13 }
  0x17   : > { %p1036_p5 = por %p995_p2, %p49_p13  ;;  %s37_s10 = ssub.s32 %s920_s18, %s1133_s6 }
  0x18   : > { %p710_p7 = scmp.lt.s32.totalorder %s924_s19, 2  ;;  %p40_p9 = scmp.eq.s32.totalorder %s37_s10, 0 }
  0x19   : > { %s164_s11 = sand.u32 1, %s912_s16   ;;  %s669_s2 = sshll.u32 %s920_s18, 4 }
  0x1a   : > { %s583_s12 = sshll.u32 %s164_s11, 4  ;;  %s176_s26 = scalar_lea.hbm %s1116_s0, %s669_s2 }
  0x1b   : > { %s1045_s13 = scalar_select %p40_p9, %s912_s16, %s42_s7  }
  0x1c   : > { %s168_s27 = scalar_lea.vmem [#allocation4], %s583_s12  ;;  %s177_s22 = sshll.u32 %s176_s26, 4  ;;  %s178_s22 = int_to_ptr.hbm [resolvable:$true] %s177_s22 }
  0x1d   : > { %s179_s29 = sshll.u32 %s168_s27, 4  ;;  %p702_p2 = pnand %p710_p7, %p1030_p3  ;;  %s180_s29 = int_to_ptr.vmem [resolvable:$true] %s179_s29 }
  0x1e   : > { %s165_s30 = scalar_lea.sflag [#allocation5], %s164_s11  ;;  %s929_s4 = smov 128  }
  0x1f   : > { %s930_s5 = smov 8   ;;  %191 = sbr.rel (%p1014_p8) target bundleno = 359 (0x167), region = 32 }
  0x20   : > { %704 = dma.hbm_to_vmem [thread:$0]  (!%p702_p2), %s178_s22, 256, %s180_s29, %s165_s30, %s929_s4, %s929_s4, %s930_s5  }
  0x21   : > { %s1056_s7 = sand.u32 (!%p1014_p8), 1, %s908_s15  }
  0x22   : > { %s588_s10 = sshll.u32 (!%p1014_p8), %s1056_s7, 4  ;;  %s194_s12 = scalar_lea.sflag (!%p1014_p8), [#allocation5], %s1056_s7 }
  0x23   : > { %s1062_s2 = scalar_lea.vmem (!%p1014_p8), [#allocation4], %s588_s10 }
  0x24   : > { %891 = dma.done.wait (%p1001_p4), %s194_s12, 256  }
  0x25   : > { %893 = vsyncadd (%p1001_p4), %s194_s12, 4294967040 }
  0x26   : > { %895 = dma.done.wait (%p991_p1), [#allocation8], 2048  }
  0x27   : > { %897 = vsyncadd (%p991_p1), [#allocation8], 4294965248  ;;  %v677_v0 = vld [vmem:[#allocation7 + $0x38] sm:$0xff]  ;;  %v676_v2 = vld [vmem:[#allocation7 + $0x30] sm:$0xff]  ;;  %s414_s21 = sld [smem:[#allocation3]]  ;;  %v931_v22 = vmov 0  }
  0x28   : > { %v685_v1 = vld [vmem:[#allocation7 + $0x78] sm:$0xff]  ;;  %377 = vmatpush.bf16.msra.mxu0 %v677_v0  ;;  %v684_v3 = vld [vmem:[#allocation7 + $0x70] sm:$0xff]  ;;  %v675_v4 = vld [vmem:[#allocation7 + $0x28] sm:$0xff]  ;;  %769 = vset.pattern.permute.xlu0 %v931_v22  ;;  %s688_s23 = sshll.u32 %s916_s17, 4  ;;  %s225_s20 = scalar_lea.vmem [#allocation9], %s588_s10 }
  0x29   : > { %391 = vmatpush.bf16.msra.mxu1 %v685_v1  ;;  %v683_v5 = vld [vmem:[#allocation7 + $0x68] sm:$0xff]  ;;  %v674_v6 = vld [vmem:[#allocation7 + $0x20] sm:$0xff]  ;;  %v673_v8 = vld [vmem:[#allocation7 + $0x18] sm:$0xff]  ;;  %s480_s11 = scalar_lea.hbm %s1119_s3, %s688_s23  ;;  %s481_s25 = sshll.u32 %s225_s20, 4  ;;  %s482_s25 = int_to_ptr.vmem [resolvable:$true] %s481_s25 }
  0x2a   : > { %v682_v7 = vld [vmem:[#allocation7 + $0x60] sm:$0xff]  ;;  %v681_v9 = vld [vmem:[#allocation7 + $0x58] sm:$0xff]  ;;  %v672_v10 = vld [vmem:[#allocation7 + $0x10] sm:$0xff]  ;;  %s483_s26 = sshll.u32 %s480_s11, 4  ;;  %s469_s27 = scalar_lea.sflag [#allocation6], %s1056_s7  ;;  %s484_s26 = int_to_ptr.hbm [resolvable:$true] %s483_s26 }
  0x2b   : > { %v680_v11 = vld [vmem:[#allocation7 + $0x50] sm:$0xff]  ;;  %v671_v12 = vld [vmem:[#allocation7 + $0x8] sm:$0xff]  ;;  %v670_v14 = vld [vmem:[#allocation7] sm:$0xff]  ;;  %s852_s29 = sshra.s32 %s484_s26, 4  ;;  %s858_s4 = scalar_lea.hbm %s1119_s3, 32  ;;  %s853_s29 = int_to_ptr.hbm [resolvable:$true] %s852_s29 }
  0x2c   : > { %378 = vmatpush.bf16.msra.mxu0 %v676_v2  ;;  %v679_v13 = vld [vmem:[#allocation7 + $0x48] sm:$0xff]  ;;  %v678_v15 = vld [vmem:[#allocation7 + $0x40] sm:$0xff]  ;;  %s854_s22 = scalar_lea.hbm %s853_s29, 16  ;;  %p859_p10 = scmp.lt.s32.totalorder %s853_s29, %s1119_s3 }
  0x2d   : > { %392 = vmatpush.bf16.msra.mxu1 %v684_v3  ;;  %v593_v16 = vld [vmem:[%s1062_s2] sm:$0xf]  ;;  %v687_v17 = vld [vmem:[%s1062_s2 + $0x4] sm:$0xf0]  ;;  %v686_v18 = vld [vmem:[%s1062_s2 + $0x4] sm:$0xf]  ;;  %v415_v25 = vstv %s414_s21  ;;  %p855_p1 = scmp.ne.s32.totalorder %s853_s29, %s854_s22  ;;  %p860_p12 = scmp.lt.s32.totalorder %s858_s4, %s854_s22 }
  0x2e   : > { %v595_v19 = vld [vmem:[%s1062_s2 + $0x8] sm:$0xf0]  ;;  %v594_v20 = vor.u32 %v687_v17, %v593_v16 }
  0x2f   : > { %v598_v21 = vor.u32 %v686_v18, %v595_v19  ;;  %p856_p4 = pnand %p855_p1, %p1036_p5  ;;  %p861_p13 = por %p860_p12, %p859_p10 }
  0x30   : > { %379 = vmatpush.bf16.msra.mxu0 %v675_v4 }
  0x31   : > { %393 = vmatpush.bf16.msra.mxu1 %v683_v5  ;;  %p857_p8 = pneg %p856_p4 }
  0x33   : > { %p862_p0 = pnand %p861_p13, %p857_p8 }
  0x34   : > { %380 = vmatpush.bf16.msra.mxu0 %v674_v6 }
  0x35   : > { %394 = vmatpush.bf16.msra.mxu1 %v682_v7 }
  0x38   : > { %381 = vmatpush.bf16.msra.mxu0 %v673_v8 }
  0x39   : > { %395 = vmatpush.bf16.msra.mxu1 %v681_v9 }
  0x3c   : > { %382 = vmatpush.bf16.msra.mxu0 %v672_v10 }
  0x3d   : > { %396 = vmatpush.bf16.msra.mxu1 %v680_v11 }
  0x40   : > { %383 = vmatpush.bf16.msra.mxu0 %v671_v12 }
  0x41   : > { %397 = vmatpush.bf16.msra.mxu1 %v679_v13 }
  0x44   : > { %384 = vmatpush.bf16.msra.mxu0 %v670_v14 }
  0x45   : > { %398 = vmatpush.bf16.msra.mxu1 %v678_v15 }
  0x47   : > { %385 = vmatmul.bf16.vlgmr.msra.gmra.mxu0 %v594_v20 }
  0x48   : > { %399 = vmatmul.bf16.vlgmr.msra.gmra.mxu1 %v598_v21 }
  0xc4   : > { %v386_v23 = vpop.f32.mrf.mxu0 }
  0xc5   : > { %v400_v24 = vpop.f32.mrf.mxu1 }
  0xc6   : > { %v401_v26 = vadd.f32 %v400_v24, %v386_v23 }
  0xc8   : > { %v416_v27 = vadd.f32 %v415_v25, %v401_v26 }
  0xca   : > { %v418_v28 = vsub.f32 0.0, %v416_v27 }
  0xcc   : > { %v420_v29 = vmul.f32 1.442695, %v418_v28  ;;  %v388_v30 = vpop.f32.mrf.mxu0 }
  0xcd   : > { %v402_v31 = vpop.f32.mrf.mxu1 }
  0xce   : > { %770 = vpow2.f32 %v420_v29  ;;  %v403_v32 = vadd.f32 %v402_v31, %v388_v30 }
  0xd0   : > { %v417_v33 = vadd.f32 %v415_v25, %v403_v32 }
  0xd2   : > { %v419_v34 = vsub.f32 0.0, %v417_v33 }
  0xd4   : > { %v771_v35 = vpop.eup %770  ;;  %v422_v36 = vmul.f32 1.442695, %v419_v34 }
  0xd5   : > { %v424_v37 = vadd.f32 1.0, %v771_v35 }
  0xd6   : > { %772 = vpow2.f32 %v422_v36 }
  0xd7   : > { %774 = vrcp.f32 %v424_v37  ;;  %v437_v43 = vand.u32 2147483648, %v424_v37  ;;  %v435_v45 = vand.u32 2147483647, %v424_v37  ;;  %vm431_vm1 = vweird.f32 %v424_v37 }
  0xd9   : > { %v438_v48 = vor.u32 1.1754944e-38, %v437_v43  ;;  %vm436_vm3 = vcmp.eq.f32.partialorder %v435_v45, 8.507059e+37 }
  0xdc   : > { %v773_v38 = vpop.eup %772 }
  0xdd   : > { %v775_v39 = vpop.eup %774  ;;  %v425_v40 = vadd.f32 1.0, %v773_v38 }
  0xde   : > { %v427_v41 = vmul.f32 %v775_v39, %v424_v37  ;;  %vm432_vm0 = vweird.f32 %v775_v39 }
  0xdf   : > { %776 = vrcp.f32 %v425_v40  ;;  %vm433_vm2 = vmor %vm431_vm1, %vm432_vm0  ;;  %v452_v53 = vand.u32 2147483648, %v425_v40  ;;  %v450_v55 = vand.u32 2147483647, %v425_v40  ;;  %vm446_vm5 = vweird.f32 %v425_v40 }
  0xe0   : > { %v428_v42 = vsub.f32 1.0, %v427_v41 }
  0xe1   : > { %v453_v57 = vor.u32 1.1754944e-38, %v452_v53  ;;  %vm451_vm7 = vcmp.eq.f32.partialorder %v450_v55, 8.507059e+37 }
  0xe2   : > { %v429_v44 = vmul.f32 %v775_v39, %v428_v42 }
  0xe4   : > { %v430_v46 = vadd.f32 %v775_v39, %v429_v44 }
  0xe5   : > { %v777_v47 = vpop.eup %776 }
  0xe6   : > { %v434_v49 = vsel %vm433_vm2, %v775_v39, %v430_v46  ;;  %v442_v50 = vmul.f32 %v777_v47, %v425_v40  ;;  %vm447_vm4 = vweird.f32 %v777_v47 }
  0xe7   : > { %v439_v51 = vsel %vm436_vm3, %v438_v48, %v434_v49  ;;  %vm448_vm6 = vmor %vm446_vm5, %vm447_vm4 }
  0xe8   : > { %458 = vperm.xlu0 %769, %v439_v51   ;;  %v443_v52 = vsub.f32 1.0, %v442_v50 }
  0xea   : > { %v444_v54 = vmul.f32 %v777_v47, %v443_v52 }
  0xec   : > { %v445_v56 = vadd.f32 %v777_v47, %v444_v54 }
  0xee   : > { %v449_v58 = vsel %vm448_vm6, %v777_v47, %v445_v56 }
  0xef   : > { %v454_v59 = vsel %vm451_vm7, %v453_v57, %v449_v58 }
  0xf0   : > { %463 = vperm.xlu0 %769, %v454_v59  }
 0x15a   : > { %v459_v60 = vpop.permute.xlu0 %458 }
 0x15b   : > { %466 = vst [vmem:[%s225_s20] sm:$0xff] %v459_v60 }
 0x162   : > { %v464_v61 = vpop.permute.xlu0 %463 }
 0x163   : > { %467 = vst [vmem:[%s225_s20 + $0x8] sm:$0xff] %v464_v61 }
 0x164   : > { %865 = shalt.err (!%p862_p0)
}
 0x165   : > { %s932_s7 = smov 128   ;;  %s933_s12 = smov 8  }
 0x166   : > { %695 = dma.vmem_to_hbm [thread:$0]  (%p1036_p5), %s482_s25, 256, %s484_s26, %s469_s27, %s932_s7, %s932_s7, %s933_s12  }
 0x167 PF: > { %s498_s2 = sand.u32 1, %s904_s14   ;;  %p706_p3 = pnand %p582_p11, %p1006_p6 }
 0x168   : > { %s499_s21 = scalar_lea.sflag [#allocation6], %s498_s2 }
 0x169   : > { %p707_p7 = pneg %p706_p3 }
 0x16b   : > { %899 = dma.done.wait (%p707_p7), %s499_s21, 256  }
 0x16c   : > { %901 = vsyncadd (%p707_p7), %s499_s21, 4294967040  ;;  %s21_s19 = sadd.s32 1, %s924_s19   ;;  %s1127_s14 = smov %s908_s15 }
 0x16d   : > { %p18_p9 = scmp.ge.s32.totalorder %s21_s19, 4   ;;  %s1128_s15 = smov %s912_s16 }
 0x16e   : > { %s1129_s16 = smov %s1045_s13  ;;  %s1130_s17 = smov %s920_s18 }
 0x16f   : > { %s1131_s18 = smov %s1133_s6  ;;  %20 = sbr.rel (!%p18_p9) target bundleno = 9 (0x9), region = 89 }
 0x174   :  { %505 = vsyncpa [#allocation5], 1 }
 0x175   :  { %507 = vsyncpa [#allocation5 + $0x1], 1 }
 0x176   :  { %508 = vsyncpa [#allocation8], 1 }
 0x177   :  { %509 = vsyncpa [#allocation6], 1 }
 0x178   :  { %511 = vsyncpa [#allocation6 + $0x1], 1 }

</bundles_post_ra>
